<compile_context>
chip_gen: v5e
topology: v5e:2x2
jax: 0.10.0
libtpu: 0.0.40
codegen_flags: <defaults>
</compile_context>

<pallas_src>
import jax
import jax.numpy as jnp
from jax.experimental import pallas as pl
from jax.experimental.pallas import tpu as pltpu


def gcn_fused_kernel(a_ref, x_ref, w1_ref, b1_ref, w2_ref, b2_ref, o_ref):
    """Fused 2-layer GCN: relu((A@X)@W1+b1) -> A@(h@W2)+b2 -> log_softmax."""
    a = a_ref[...]                                   # (N, N), reused twice

    # ---- Layer 1: aggregate-then-transform (F_in << H => fewer MACs). ----
    ax = jnp.dot(a, x_ref[...], preferred_element_type=jnp.float32)
    h = jnp.dot(ax, w1_ref[...], preferred_element_type=jnp.float32) + b1_ref[...]
    h = jnp.maximum(h, 0.0)                          # ReLU, stays in vregs/VMEM

    # ---- Layer 2: transform-then-aggregate (O << H => fewer MACs). ----
    hw2 = jnp.dot(h, w2_ref[...], preferred_element_type=jnp.float32)
    logits = jnp.dot(a, hw2, preferred_element_type=jnp.float32) + b2_ref[...]

    # ---- Row-wise log-softmax over the real output columns. ----
    m = jnp.max(logits, axis=-1, keepdims=True)
    s = logits - m
    lse = jnp.log(jnp.sum(jnp.exp(s), axis=-1, keepdims=True))
    o_ref[...] = (s - lse).astype(o_ref.dtype)       # (N, out_dim) store


def gcn_forward(x, a_norm, w1, b1_2d, w2, b2_2d):
    """Single fused pallas_call over full-array blocks (tiny graph)."""
    n, f_in = x.shape
    hidden = w1.shape[1]
    out_dim = w2.shape[1]

    cost = pl.CostEstimate(
        flops=2 * (n * n * f_in + n * f_in * hidden
                   + n * hidden * out_dim + n * n * out_dim),
        transcendentals=n * out_dim,                 # exp in log-softmax
        bytes_accessed=4 * (n * n + n * f_in + f_in * hidden + hidden
                            + hidden * out_dim + out_dim + n * out_dim),
    )

    return pl.pallas_call(
        gcn_fused_kernel,
        out_shape=jax.ShapeDtypeStruct((n, out_dim), jnp.float32),
        grid_spec=pl.GridSpec(
            grid=(1,),  # tiny problem: single step, full-array blocks
            in_specs=[
                pl.BlockSpec((n, n), lambda i: (0, 0)),           # A_norm
                pl.BlockSpec((n, f_in), lambda i: (0, 0)),        # X
                pl.BlockSpec((f_in, hidden), lambda i: (0, 0)),   # W1
                pl.BlockSpec((1, hidden), lambda i: (0, 0)),      # b1
                pl.BlockSpec((hidden, out_dim), lambda i: (0, 0)),  # W2
                pl.BlockSpec((1, out_dim), lambda i: (0, 0)),     # b2
            ],
            out_specs=pl.BlockSpec((n, out_dim), lambda i: (0, 0)),
        ),
        compiler_params=pltpu.CompilerParams(
            dimension_semantics=("arbitrary",),
        ),
        cost_estimate=cost,
    )(a_norm, x, w1, b1_2d, w2, b2_2d)


def _glorot(key, shape):
    limit = jnp.sqrt(6.0 / (shape[0] + shape[1]))
    return jax.random.uniform(key, shape, jnp.float32, -limit, limit)


def _reference_forward(x, a_norm, w1, b1_2d, w2, b2_2d):
    """Plain-JAX reference matching the PyTorch module semantics."""
    h = jnp.maximum(a_norm @ (x @ w1) + b1_2d, 0.0)
    logits = a_norm @ (h @ w2) + b2_2d
    return jax.nn.log_softmax(logits, axis=1)


if __name__ == "__main__":
    # Small synthetic graph consistent with the module's forward pass
    # (hidden_dim=64, output_dim=2 per the spec).
    N, IN_DIM, HIDDEN, OUT_DIM, E = 64, 16, 64, 2, 256

    key = jax.random.PRNGKey(0)
    k_feat, k_row, k_col, k_w1, k_w2 = jax.random.split(key, 5)

    # Node features (data.x) and random edge_index (2, E).
    x = jax.random.normal(k_feat, (N, IN_DIM), dtype=jnp.float32)
    row = jax.random.randint(k_row, (E,), 0, N)
    col = jax.random.randint(k_col, (E,), 0, N)

    # Plain-JAX glue: dense adjacency from edge_index, symmetrized (undirected
    # scipy COO adjacency), self-loops added, then the GCNConv symmetric
    # normalization D^{-1/2} (A + I) D^{-1/2}.
    a = jnp.zeros((N, N), jnp.float32).at[row, col].set(1.0)
    a = jnp.maximum(a, a.T)
    a = a.at[jnp.arange(N), jnp.arange(N)].set(1.0)  # self loops
    deg = a.sum(axis=1)
    d_inv_sqrt = jax.lax.rsqrt(deg)
    a_norm = a * d_inv_sqrt[:, None] * d_inv_sqrt[None, :]

    # One-time parameter prep (GCNConv default: glorot weight, zero bias).
    # Biases are created directly in the (1, D) layout the kernel consumes so
    # no per-call reshape/pad ops run in the forward path.
    w1 = _glorot(k_w1, (IN_DIM, HIDDEN))
    b1 = jnp.zeros((1, HIDDEN), jnp.float32)
    w2 = _glorot(k_w2, (HIDDEN, OUT_DIM))
    b2 = jnp.zeros((1, OUT_DIM), jnp.float32)

    out = gcn_forward(x, a_norm, w1, b1, w2, b2)
    jax.block_until_ready(out)

    assert out.shape == (N, OUT_DIM)

    ref = _reference_forward(x, a_norm, w1, b1, w2, b2)
    assert jnp.allclose(out, ref, rtol=1e-2, atol=1e-2), "mismatch vs reference"
    # log-softmax rows must normalize: logsumexp per row == 0.
    assert jnp.allclose(jax.nn.logsumexp(out, axis=1), 0.0, atol=1e-4)

    print("KERNEL_OK")
</pallas_src>

<mosaic_0001>
module attributes {stable_mosaic.version = 11 : i64} {
  func.func @gcn_fused_kernel(%arg0: i32, %arg1: memref<64x64xf32, #tpu.memory_space<vmem>>, %arg2: memref<64x16xf32, #tpu.memory_space<vmem>>, %arg3: memref<16x64xf32, #tpu.memory_space<vmem>>, %arg4: memref<1x64xf32, #tpu.memory_space<vmem>>, %arg5: memref<64x2xf32, #tpu.memory_space<vmem>>, %arg6: memref<1x2xf32, #tpu.memory_space<vmem>>, %arg7: memref<64x2xf32, #tpu.memory_space<vmem>>) attributes {dimension_semantics = [#tpu.dimension_semantics<arbitrary>], iteration_bounds = array<i64: 1>, scalar_prefetch = 0 : i64, scratch_operands = 0 : i64, tpu.core_type = #tpu.core_type<tc>, window_params = [{pipeline_mode = #tpu.pipeline_mode<synchronous>, transform_indices = @transform_0, window_bounds = array<i64: 64, 64>}, {pipeline_mode = #tpu.pipeline_mode<synchronous>, transform_indices = @transform_1, window_bounds = array<i64: 64, 16>}, {pipeline_mode = #tpu.pipeline_mode<synchronous>, transform_indices = @transform_2, window_bounds = array<i64: 16, 64>}, {pipeline_mode = #tpu.pipeline_mode<synchronous>, transform_indices = @transform_3, window_bounds = array<i64: 1, 64>}, {pipeline_mode = #tpu.pipeline_mode<synchronous>, transform_indices = @transform_4, window_bounds = array<i64: 64, 2>}, {pipeline_mode = #tpu.pipeline_mode<synchronous>, transform_indices = @transform_5, window_bounds = array<i64: 1, 2>}, {pipeline_mode = #tpu.pipeline_mode<synchronous>, transform_indices = @transform_6, window_bounds = array<i64: 64, 2>}]} {
    %c0 = arith.constant 0 : index
    %c0_0 = arith.constant 0 : index
    %0 = vector.load %arg1[%c0, %c0_0] : memref<64x64xf32, #tpu.memory_space<vmem>>, vector<64x64xf32>
    %c0_1 = arith.constant 0 : index
    %c0_2 = arith.constant 0 : index
    %1 = vector.load %arg2[%c0_1, %c0_2] : memref<64x16xf32, #tpu.memory_space<vmem>>, vector<64x16xf32>
    %cst = arith.constant dense<0.000000e+00> : vector<64x16xf32>
    %2 = tpu.matmul %0, %1, %cst {dimension_numbers = #tpu.dot_dimension_numbers<[1], [0], [0], [1], [0, 0, 1, 1], [], []>} : vector<64x64xf32>, vector<64x16xf32>, vector<64x16xf32> -> vector<64x16xf32>
    %c0_3 = arith.constant 0 : index
    %c0_4 = arith.constant 0 : index
    %3 = vector.load %arg3[%c0_3, %c0_4] : memref<16x64xf32, #tpu.memory_space<vmem>>, vector<16x64xf32>
    %cst_5 = arith.constant dense<0.000000e+00> : vector<64x64xf32>
    %4 = tpu.matmul %2, %3, %cst_5 {dimension_numbers = #tpu.dot_dimension_numbers<[1], [0], [0], [1], [0, 0, 1, 1], [], []>} : vector<64x16xf32>, vector<16x64xf32>, vector<64x64xf32> -> vector<64x64xf32>
    %c0_6 = arith.constant 0 : index
    %c0_7 = arith.constant 0 : index
    %5 = vector.load %arg4[%c0_6, %c0_7] : memref<1x64xf32, #tpu.memory_space<vmem>>, vector<1x64xf32>
    %6 = vector.broadcast %5 : vector<1x64xf32> to vector<64x64xf32>
    %7 = arith.addf %4, %6 : vector<64x64xf32>
    %cst_8 = arith.constant 0.000000e+00 : f32
    %8 = vector.broadcast %cst_8 : f32 to vector<64x64xf32>
    %9 = arith.maximumf %7, %8 : vector<64x64xf32>
    %c0_9 = arith.constant 0 : index
    %c0_10 = arith.constant 0 : index
    %10 = vector.load %arg5[%c0_9, %c0_10] : memref<64x2xf32, #tpu.memory_space<vmem>>, vector<64x2xf32>
    %cst_11 = arith.constant dense<0.000000e+00> : vector<64x2xf32>
    %11 = tpu.matmul %9, %10, %cst_11 {dimension_numbers = #tpu.dot_dimension_numbers<[1], [0], [0], [1], [0, 0, 1, 1], [], []>} : vector<64x64xf32>, vector<64x2xf32>, vector<64x2xf32> -> vector<64x2xf32>
    %cst_12 = arith.constant dense<0.000000e+00> : vector<64x2xf32>
    %12 = tpu.matmul %0, %11, %cst_12 {dimension_numbers = #tpu.dot_dimension_numbers<[1], [0], [0], [1], [0, 0, 1, 1], [], []>} : vector<64x64xf32>, vector<64x2xf32>, vector<64x2xf32> -> vector<64x2xf32>
    %c0_13 = arith.constant 0 : index
    %c0_14 = arith.constant 0 : index
    %13 = vector.load %arg6[%c0_13, %c0_14] : memref<1x2xf32, #tpu.memory_space<vmem>>, vector<1x2xf32>
    %14 = vector.broadcast %13 : vector<1x2xf32> to vector<64x2xf32>
    %15 = arith.addf %12, %14 : vector<64x2xf32>
    %cst_15 = arith.constant dense<0xFF800000> : vector<64xf32>
    %16 = vector.multi_reduction <maximumf>, %15, %cst_15 [1] : vector<64x2xf32> to vector<64xf32>
    %17 = vector.shape_cast %16 : vector<64xf32> to vector<64x1xf32>
    %18 = vector.broadcast %17 : vector<64x1xf32> to vector<64x2xf32>
    %19 = arith.subf %15, %18 : vector<64x2xf32>
    %20 = math.exp %19 : vector<64x2xf32>
    %cst_16 = arith.constant dense<0.000000e+00> : vector<64xf32>
    %21 = vector.multi_reduction <add>, %20, %cst_16 [1] : vector<64x2xf32> to vector<64xf32>
    %22 = vector.shape_cast %21 : vector<64xf32> to vector<64x1xf32>
    %23 = math.log %22 : vector<64x1xf32>
    %24 = vector.broadcast %23 : vector<64x1xf32> to vector<64x2xf32>
    %25 = arith.subf %19, %24 : vector<64x2xf32>
    %c0_17 = arith.constant 0 : index
    %c0_18 = arith.constant 0 : index
    %26 = vector.load %arg7[%c0_17, %c0_18] : memref<64x2xf32, #tpu.memory_space<vmem>>, vector<64x2xf32>
    tpu.vector_store %arg7[%c0_17, %c0_18], %25 {strides = array<i32>} : memref<64x2xf32, #tpu.memory_space<vmem>>, vector<64x2xf32>,
    return
  }
  func.func @transform_0(%arg0: i32) -> (i32, i32) {
    %c0_i32 = arith.constant 0 : i32
    %c0_i32_0 = arith.constant 0 : i32
    %c0_i32_1 = arith.constant 0 : i32
    return %c0_i32, %c0_i32_0 : i32, i32
  }
  func.func @transform_1(%arg0: i32) -> (i32, i32) {
    %c0_i32 = arith.constant 0 : i32
    %c0_i32_0 = arith.constant 0 : i32
    %c0_i32_1 = arith.constant 0 : i32
    return %c0_i32, %c0_i32_0 : i32, i32
  }
  func.func @transform_2(%arg0: i32) -> (i32, i32) {
    %c0_i32 = arith.constant 0 : i32
    %c0_i32_0 = arith.constant 0 : i32
    %c0_i32_1 = arith.constant 0 : i32
    return %c0_i32, %c0_i32_0 : i32, i32
  }
  func.func @transform_3(%arg0: i32) -> (i32, i32) {
    %c0_i32 = arith.constant 0 : i32
    %c0_i32_0 = arith.constant 0 : i32
    %c0_i32_1 = arith.constant 0 : i32
    return %c0_i32, %c0_i32_0 : i32, i32
  }
  func.func @transform_4(%arg0: i32) -> (i32, i32) {
    %c0_i32 = arith.constant 0 : i32
    %c0_i32_0 = arith.constant 0 : i32
    %c0_i32_1 = arith.constant 0 : i32
    return %c0_i32, %c0_i32_0 : i32, i32
  }
  func.func @transform_5(%arg0: i32) -> (i32, i32) {
    %c0_i32 = arith.constant 0 : i32
    %c0_i32_0 = arith.constant 0 : i32
    %c0_i32_1 = arith.constant 0 : i32
    return %c0_i32, %c0_i32_0 : i32, i32
  }
  func.func @transform_6(%arg0: i32) -> (i32, i32) {
    %c0_i32 = arith.constant 0 : i32
    %c0_i32_0 = arith.constant 0 : i32
    %c0_i32_1 = arith.constant 0 : i32
    return %c0_i32, %c0_i32_0 : i32, i32
  }
}

</mosaic_0001>

<bundles_post_ra>
// kernel: tpu_custom_call.1
= control target key start
LH: loop header
LB: loop body
LE: loop exit
PB: predicated region body
PF: predicated region fallthrough
CT: control target
= control target key end

     0   :  { %vm39_vm0 = vcmask 523264   ;;  %vm111_vm1 = vcmask 130048   ;;  %vm303_vm2 = vcmask 15360   ;;  %s729_s1 = inlined_call_operand.vmem [shape: f32[64,16], index: 1, kind: input, shape index: {}]   ;;  %s730_s0 = inlined_call_operand.vmem [shape: f32[64,64], index: 0, kind: input, shape index: {}]   ;;  %s731_s2 = inlined_call_operand.vmem [shape: f32[16,64], index: 2, kind: input, shape index: {}]   ;;  %s732_s3 = inlined_call_operand.vmem [shape: f32[1,64], index: 3, kind: input, shape index: {}]   ;;  %s733_s4 = inlined_call_operand.vmem [shape: f32[64,2], index: 4, kind: input, shape index: {}]   ;;  %s734_s5 = inlined_call_operand.vmem [shape: f32[1,2], index: 5, kind: input, shape index: {}]   ;;  %s735_s6 = inlined_call_operand.vmem [shape: f32[64,2], index: 6, kind: output, shape index: {}]  }
   0x1   :  { %v38_v0 = vld [vmem:[%s729_s1 + $0x38] sm:$0xff]  ;;  %v37_v1 = vld [vmem:[%s729_s1 + $0x30] sm:$0xff]  ;;  %v36_v2 = vld [vmem:[%s729_s1 + $0x28] sm:$0xff] }
   0x2   :  { %72 = vmatpush.msra.mxu0 %v38_v0  ;;  %v35_v3 = vld [vmem:[%s729_s1 + $0x20] sm:$0xff]  ;;  %v34_v4 = vld [vmem:[%s729_s1 + $0x18] sm:$0xff]  ;;  %v33_v5 = vld [vmem:[%s729_s1 + $0x10] sm:$0xff] }
   0x3   :  { %v32_v6 = vld [vmem:[%s729_s1 + $0x8] sm:$0xff]  ;;  %v31_v7 = vld [vmem:[%s729_s1] sm:$0xff]  ;;  %v554_v10 = vld [vmem:[%s730_s0 + $0x10] sm:$0xff] }
   0x4   :  { %73 = vmatpush.msra.mxu0 %v37_v1  ;;  %v540_v8 = vld [vmem:[%s730_s0] sm:$0xff]  ;;  %v547_v9 = vld [vmem:[%s730_s0 + $0x8] sm:$0xff]  ;;  %v561_v11 = vld [vmem:[%s730_s0 + $0x18] sm:$0xff] }
   0x5   :  { %v106_v12 = vld [vmem:[%s731_s2 + $0x8] sm:$0xff]  ;;  %v571_v13 = vld [vmem:[%s730_s0 + $0x20] sm:$0xff]  ;;  %v585_v15 = vld [vmem:[%s730_s0 + $0x30] sm:$0xff] }
   0x6   :  { %74 = vmatpush.msra.mxu0 %v36_v2  ;;  %150 = vmatpush.msra.mxu1 %v106_v12  ;;  %v578_v14 = vld [vmem:[%s730_s0 + $0x28] sm:$0xff]  ;;  %v592_v16 = vld [vmem:[%s730_s0 + $0x38] sm:$0xff]  ;;  %v105_v17 = vld [vmem:[%s731_s2] sm:$0xff] }
   0x7   :  { %v192_v22 = vld [vmem:[%s733_s4 + $0x38] sm:$0xff]  ;;  %v191_v23 = vld [vmem:[%s733_s4 + $0x30] sm:$0xff]  ;;  %v190_v24 = vld [vmem:[%s733_s4 + $0x28] sm:$0xff] }
   0x8   :  { %75 = vmatpush.msra.mxu0 %v35_v3  ;;  %151 = vmatpush.msra.mxu1 %v105_v17  ;;  %v189_v25 = vld [vmem:[%s733_s4 + $0x20] sm:$0xff]  ;;  %v188_v26 = vld [vmem:[%s733_s4 + $0x18] sm:$0xff]  ;;  %v187_v31 = vld [vmem:[%s733_s4 + $0x10] sm:$0xff] }
   0x9   :  { %225 = vmatpush.msra.mxu2 %v192_v22  ;;  %v186_v32 = vld [vmem:[%s733_s4 + $0x8] sm:$0xff]  ;;  %v185_v33 = vld [vmem:[%s733_s4] sm:$0xff] }
   0xa   :  { %76 = vmatpush.msra.mxu0 %v34_v4  ;;  %v444_v34 = vld [vmem:[%s732_s3] ss:$0 sm:$0xff] }
   0xb   :  { %226 = vmatpush.msra.mxu2 %v191_v23  ;;  %v445_v3 = vld [vmem:[%s734_s5] ss:$0 sm:$0xff] }
   0xc   :  { %77 = vmatpush.msra.mxu0 %v33_v5 }
   0xd   :  { %227 = vmatpush.msra.mxu2 %v190_v24 }
   0xe   :  { %78 = vmatpush.msra.mxu0 %v32_v6 }
   0xf   :  { %228 = vmatpush.msra.mxu2 %v189_v25 }
  0x10   :  { %79 = vmatpush.msra.mxu0 %v31_v7 }
  0x11   :  { %412 = vmatmul.msk.f32.vlgmr.msra.gmra.mxu0 %vm39_vm0, %v540_v8  ;;  %229 = vmatpush.msra.mxu2 %v188_v26 }
  0x13   :  { %230 = vmatpush.msra.mxu2 %v187_v31 }
  0x15   :  { %231 = vmatpush.msra.mxu2 %v186_v32 }
  0x17   :  { %232 = vmatpush.msra.mxu2 %v185_v33 }
  0x19   :  { %413 = vmatmul.msk.f32.gmra.mxu0 %vm39_vm0, %v547_v9 }
  0x21   :  { %414 = vmatmul.msk.f32.gmra.mxu0 %vm39_vm0, %v554_v10 }
  0x29   :  { %415 = vmatmul.msk.f32.gmra.mxu0 %vm39_vm0, %v561_v11 }
  0x31   :  { %416 = vmatmul.msk.f32.gmra.mxu0 %vm39_vm0, %v571_v13 }
  0x39   :  { %417 = vmatmul.msk.f32.gmra.mxu0 %vm39_vm0, %v578_v14 }
  0x41   :  { %418 = vmatmul.msk.f32.gmra.mxu0 %vm39_vm0, %v585_v15 }
  0x49   :  { %419 = vmatmul.msk.f32.gmra.mxu0 %vm39_vm0, %v592_v16 }
  0x8e   :  { %v81_v18 = vpop.f32.mrf.mxu0 }
  0x8f   :  { %420 = vmatmul.msk.f32.vlgmr.msra.gmra.mxu1 %vm111_vm1, %v81_v18 }
  0x96   :  { %v84_v19 = vpop.f32.mrf.mxu0 }
  0x97   :  { %421 = vmatmul.msk.f32.gmra.mxu1 %vm111_vm1, %v84_v19 }
  0x9e   :  { %v87_v20 = vpop.f32.mrf.mxu0 }
  0x9f   :  { %422 = vmatmul.msk.f32.gmra.mxu1 %vm111_vm1, %v87_v20 }
  0xa6   :  { %v90_v21 = vpop.f32.mrf.mxu0 }
  0xa7   :  { %423 = vmatmul.msk.f32.gmra.mxu1 %vm111_vm1, %v90_v21 }
  0xae   :  { %v93_v27 = vpop.f32.mrf.mxu0 }
  0xaf   :  { %424 = vmatmul.msk.f32.gmra.mxu1 %vm111_vm1, %v93_v27 }
  0xb6   :  { %v96_v28 = vpop.f32.mrf.mxu0 }
  0xb7   :  { %425 = vmatmul.msk.f32.gmra.mxu1 %vm111_vm1, %v96_v28 }
  0xbe   :  { %v99_v29 = vpop.f32.mrf.mxu0 }
  0xbf   :  { %426 = vmatmul.msk.f32.gmra.mxu1 %vm111_vm1, %v99_v29 }
  0xc6   :  { %v102_v30 = vpop.f32.mrf.mxu0 }
  0xc7   :  { %427 = vmatmul.msk.f32.gmra.mxu1 %vm111_vm1, %v102_v30 }
 0x10c   :  { %v153_v35 = vpop.f32.mrf.mxu1 }
 0x10d   :  { %v154_v36 = vadd.f32 %v444_v34, %v153_v35 }
 0x10f   :  { %v177_v37 = vmax.f32 %v154_v36, 0.0 }
 0x111   :  { %428 = vmatmul.msk.f32.vlgmr.msra.gmra.mxu2 %vm39_vm0, %v177_v37 }
 0x114   :  { %v156_v38 = vpop.f32.mrf.mxu1 }
 0x115   :  { %v157_v39 = vadd.f32 %v444_v34, %v156_v38 }
 0x117   :  { %v178_v40 = vmax.f32 %v157_v39, 0.0 }
 0x119   :  { %429 = vmatmul.msk.f32.gmra.mxu2 %vm39_vm0, %v178_v40 }
 0x11c   :  { %v159_v41 = vpop.f32.mrf.mxu1 }
 0x11d   :  { %v160_v42 = vadd.f32 %v444_v34, %v159_v41 }
 0x11f   :  { %v179_v43 = vmax.f32 %v160_v42, 0.0 }
 0x121   :  { %430 = vmatmul.msk.f32.gmra.mxu2 %vm39_vm0, %v179_v43 }
 0x124   :  { %v162_v44 = vpop.f32.mrf.mxu1 }
 0x125   :  { %v163_v45 = vadd.f32 %v444_v34, %v162_v44 }
 0x127   :  { %v180_v46 = vmax.f32 %v163_v45, 0.0 }
 0x129   :  { %431 = vmatmul.msk.f32.gmra.mxu2 %vm39_vm0, %v180_v46 }
 0x12c   :  { %v165_v47 = vpop.f32.mrf.mxu1 }
 0x12d   :  { %v166_v48 = vadd.f32 %v444_v34, %v165_v47 }
 0x12f   :  { %v181_v49 = vmax.f32 %v166_v48, 0.0 }
 0x131   :  { %432 = vmatmul.msk.f32.gmra.mxu2 %vm39_vm0, %v181_v49 }
 0x134   :  { %v168_v50 = vpop.f32.mrf.mxu1 }
 0x135   :  { %v169_v51 = vadd.f32 %v444_v34, %v168_v50 }
 0x137   :  { %v182_v52 = vmax.f32 %v169_v51, 0.0 }
 0x139   :  { %433 = vmatmul.msk.f32.gmra.mxu2 %vm39_vm0, %v182_v52 }
 0x13c   :  { %v171_v53 = vpop.f32.mrf.mxu1 }
 0x13d   :  { %v172_v54 = vadd.f32 %v444_v34, %v171_v53 }
 0x13f   :  { %v183_v55 = vmax.f32 %v172_v54, 0.0 }
 0x141   :  { %434 = vmatmul.msk.f32.gmra.mxu2 %vm39_vm0, %v183_v55 }
 0x144   :  { %v174_v56 = vpop.f32.mrf.mxu1 }
 0x145   :  { %v175_v57 = vadd.f32 %v444_v34, %v174_v56 }
 0x147   :  { %v184_v58 = vmax.f32 %v175_v57, 0.0 }
 0x149   :  { %435 = vmatmul.msk.f32.gmra.mxu2 %vm39_vm0, %v184_v58 }
 0x194   :  { %v234_v59 = vpop.f32.mrf.mxu2 }
 0x19c   :  { %v237_v60 = vpop.f32.mrf.mxu2 }
 0x1a4   :  { %v240_v61 = vpop.f32.mrf.mxu2 }
 0x1ac   :  { %v243_v62 = vpop.f32.mrf.mxu2 }
 0x1b4   :  { %v246_v63 = vpop.f32.mrf.mxu2 }
 0x1bc   :  { %v249_v0 = vpop.f32.mrf.mxu2 }
 0x1c4   :  { %v252_v1 = vpop.f32.mrf.mxu2 }
 0x1cc   :  { %v255_v2 = vpop.f32.mrf.mxu2 }
 0x1cd   :  { %270 = vmatpush.msra.mxu3 %v255_v2 }
 0x1cf   :  { %271 = vmatpush.msra.mxu3 %v252_v1 }
 0x1d1   :  { %272 = vmatpush.msra.mxu3 %v249_v0 }
 0x1d3   :  { %273 = vmatpush.msra.mxu3 %v246_v63 }
 0x1d5   :  { %274 = vmatpush.msra.mxu3 %v243_v62 }
 0x1d7   :  { %275 = vmatpush.msra.mxu3 %v240_v61 }
 0x1d9   :  { %276 = vmatpush.msra.mxu3 %v237_v60 }
 0x1db   :  { %277 = vmatpush.msra.mxu3 %v234_v59 }
 0x1dc   :  { %436 = vmatmul.msk.f32.vlgmr.msra.gmra.mxu3 %vm39_vm0, %v540_v8 }
 0x1e4   :  { %437 = vmatmul.msk.f32.gmra.mxu3 %vm39_vm0, %v547_v9 }
 0x1ec   :  { %438 = vmatmul.msk.f32.gmra.mxu3 %vm39_vm0, %v554_v10 }
 0x1f4   :  { %439 = vmatmul.msk.f32.gmra.mxu3 %vm39_vm0, %v561_v11 }
 0x1fc   :  { %440 = vmatmul.msk.f32.gmra.mxu3 %vm39_vm0, %v571_v13 }
 0x204   :  { %441 = vmatmul.msk.f32.gmra.mxu3 %vm39_vm0, %v578_v14 }
 0x20c   :  { %442 = vmatmul.msk.f32.gmra.mxu3 %vm39_vm0, %v585_v15 }
 0x214   :  { %443 = vmatmul.msk.f32.gmra.mxu3 %vm39_vm0, %v592_v16 }
 0x25f   :  { %v279_v4 = vpop.f32.mrf.mxu3 }
 0x260   :  { %v280_v5 = vadd.f32 %v445_v3, %v279_v4 }
 0x262   :  { %v304_v6 = vsel %vm303_vm2, %v280_v5, -inf }
 0x263   :  { %305 = vmax.xlane.f32.xlu0 %v304_v6 }
 0x267   :  { %v282_v7 = vpop.f32.mrf.mxu3 }
 0x268   :  { %v283_v8 = vadd.f32 %v445_v3, %v282_v7 }
 0x26a   :  { %v307_v9 = vsel %vm303_vm2, %v283_v8, -inf }
 0x26b   :  { %308 = vmax.xlane.f32.xlu0 %v307_v9 }
 0x26f   :  { %v285_v10 = vpop.f32.mrf.mxu3 }
 0x270   :  { %v286_v11 = vadd.f32 %v445_v3, %v285_v10 }
 0x272   :  { %v310_v12 = vsel %vm303_vm2, %v286_v11, -inf }
 0x273   :  { %311 = vmax.xlane.f32.xlu1 %v310_v12 }
 0x277   :  { %v288_v13 = vpop.f32.mrf.mxu3 }
 0x278   :  { %v289_v14 = vadd.f32 %v445_v3, %v288_v13 }
 0x27a   :  { %v313_v15 = vsel %vm303_vm2, %v289_v14, -inf }
 0x27b   :  { %314 = vmax.xlane.f32.xlu1 %v313_v15 }
 0x27f   :  { %v291_v16 = vpop.f32.mrf.mxu3 }
 0x280   :  { %v292_v17 = vadd.f32 %v445_v3, %v291_v16 }
 0x282   :  { %v316_v18 = vsel %vm303_vm2, %v292_v17, -inf }
 0x283   :  { %317 = vmax.xlane.f32.xlu2 %v316_v18 }
 0x287   :  { %v294_v19 = vpop.f32.mrf.mxu3 }
 0x288   :  { %v295_v20 = vadd.f32 %v445_v3, %v294_v19 }
 0x28a   :  { %v319_v21 = vsel %vm303_vm2, %v295_v20, -inf }
 0x28b   :  { %320 = vmax.xlane.f32.xlu2 %v319_v21 }
 0x28f   :  { %v297_v22 = vpop.f32.mrf.mxu3 }
 0x290   :  { %v298_v23 = vadd.f32 %v445_v3, %v297_v22 }
 0x292   :  { %v322_v24 = vsel %vm303_vm2, %v298_v23, -inf }
 0x293   :  { %323 = vmax.xlane.f32.xlu0 %v322_v24 }
 0x297   :  { %v300_v25 = vpop.f32.mrf.mxu3 }
 0x298   :  { %v301_v26 = vadd.f32 %v445_v3, %v300_v25 }
 0x29a   :  { %v325_v27 = vsel %vm303_vm2, %v301_v26, -inf }
 0x29b   :  { %326 = vmax.xlane.f32.xlu1 %v325_v27 }
 0x2d6   :  { %v306_v28 = vpop.xlane.xlu0 %305 }
 0x2d7   :  { %v669_v29 = vsub.f32 %v280_v5, %v306_v28 }
 0x2d9   :  { %v336_v30 = vmul.f32 1.442695, %v669_v29 }
 0x2db   :  { %446 = vpow2.f32 %v336_v30 }
 0x2de   :  { %v309_v31 = vpop.xlane.xlu0 %308 }
 0x2df   :  { %v672_v32 = vsub.f32 %v283_v8, %v309_v31 }
 0x2e1   :  { %v447_v33 = vpop.eup %446  ;;  %v338_v34 = vmul.f32 1.442695, %v672_v32 }
 0x2e2   :  { %v352_v35 = vsel %vm303_vm2, %v447_v33, 0.0 }
 0x2e3   :  { %448 = vpow2.f32 %v338_v34  ;;  %353 = vadd.xlane.f32.xlu2 %v352_v35 }
 0x2e6   :  { %v312_v36 = vpop.xlane.xlu1 %311 }
 0x2e7   :  { %v676_v37 = vsub.f32 %v286_v11, %v312_v36 }
 0x2e9   :  { %v449_v38 = vpop.eup %448  ;;  %v340_v39 = vmul.f32 1.442695, %v676_v37 }
 0x2ea   :  { %v355_v40 = vsel %vm303_vm2, %v449_v38, 0.0 }
 0x2eb   :  { %450 = vpow2.f32 %v340_v39  ;;  %356 = vadd.xlane.f32.xlu0 %v355_v40 }
 0x2ee   :  { %v315_v41 = vpop.xlane.xlu1 %314 }
 0x2ef   :  { %v680_v42 = vsub.f32 %v289_v14, %v315_v41 }
 0x2f1   :  { %v451_v43 = vpop.eup %450  ;;  %v342_v44 = vmul.f32 1.442695, %v680_v42 }
 0x2f2   :  { %v358_v45 = vsel %vm303_vm2, %v451_v43, 0.0 }
 0x2f3   :  { %452 = vpow2.f32 %v342_v44  ;;  %359 = vadd.xlane.f32.xlu1 %v358_v45 }
 0x2f6   :  { %v318_v46 = vpop.xlane.xlu2 %317 }
 0x2f7   :  { %v684_v47 = vsub.f32 %v292_v17, %v318_v46 }
 0x2f9   :  { %v453_v48 = vpop.eup %452  ;;  %v344_v49 = vmul.f32 1.442695, %v684_v47 }
 0x2fa   :  { %v361_v50 = vsel %vm303_vm2, %v453_v48, 0.0 }
 0x2fb   :  { %454 = vpow2.f32 %v344_v49  ;;  %362 = vadd.xlane.f32.xlu2 %v361_v50 }
 0x2fe   :  { %v321_v51 = vpop.xlane.xlu2 %320 }
 0x2ff   :  { %v333_v52 = vsub.f32 %v295_v20, %v321_v51 }
 0x301   :  { %v455_v53 = vpop.eup %454  ;;  %v346_v54 = vmul.f32 1.442695, %v333_v52 }
 0x302   :  { %v364_v55 = vsel %vm303_vm2, %v455_v53, 0.0 }
 0x303   :  { %456 = vpow2.f32 %v346_v54  ;;  %365 = vadd.xlane.f32.xlu0 %v364_v55 }
 0x306   :  { %v324_v56 = vpop.xlane.xlu0 %323 }
 0x307   :  { %v334_v57 = vsub.f32 %v298_v23, %v324_v56 }
 0x309   :  { %v457_v58 = vpop.eup %456  ;;  %v348_v59 = vmul.f32 1.442695, %v334_v57 }
 0x30a   :  { %v367_v60 = vsel %vm303_vm2, %v457_v58, 0.0 }
 0x30b   :  { %458 = vpow2.f32 %v348_v59  ;;  %368 = vadd.xlane.f32.xlu1 %v367_v60 }
 0x30e   :  { %v327_v61 = vpop.xlane.xlu1 %326 }
 0x30f   :  { %v335_v62 = vsub.f32 %v301_v26, %v327_v61 }
 0x311   :  { %v459_v63 = vpop.eup %458  ;;  %v350_v0 = vmul.f32 1.442695, %v335_v62 }
 0x312   :  { %v370_v1 = vsel %vm303_vm2, %v459_v63, 0.0 }
 0x313   :  { %460 = vpow2.f32 %v350_v0  ;;  %371 = vadd.xlane.f32.xlu2 %v370_v1 }
 0x319   :  { %v461_v2 = vpop.eup %460 }
 0x31a   :  { %v373_v3 = vsel %vm303_vm2, %v461_v2, 0.0 }
 0x31b   :  { %374 = vadd.xlane.f32.xlu0 %v373_v3 }
 0x356   :  { %v354_v4 = vpop.xlane.xlu2 %353 }
 0x357   :  { %462 = vlog2.f32 %v354_v4 }
 0x35d   :  { %v463_v5 = vpop.eup %462 }
 0x35e   :  { %v377_v6 = vmul.f32 0.6931472, %v463_v5  ;;  %v357_v7 = vpop.xlane.xlu0 %356 }
 0x35f   :  { %464 = vlog2.f32 %v357_v7 }
 0x360   :  { %v392_v8 = vsub.f32 %v669_v29, %v377_v6 }
 0x362   :  { %400 = vst.msk [vmem:[%s735_s6] sm:$0xff] %vm303_vm2, %v392_v8 }
 0x365   :  { %v465_v9 = vpop.eup %464 }
 0x366   :  { %v379_v10 = vmul.f32 0.6931472, %v465_v9  ;;  %v360_v11 = vpop.xlane.xlu1 %359 }
 0x367   :  { %466 = vlog2.f32 %v360_v11 }
 0x368   :  { %v393_v12 = vsub.f32 %v672_v32, %v379_v10 }
 0x36a   :  { %401 = vst.msk [vmem:[%s735_s6 + $0x8] sm:$0xff] %vm303_vm2, %v393_v12 }
 0x36d   :  { %v467_v13 = vpop.eup %466 }
 0x36e   :  { %v381_v14 = vmul.f32 0.6931472, %v467_v13  ;;  %v363_v15 = vpop.xlane.xlu2 %362 }
 0x36f   :  { %468 = vlog2.f32 %v363_v15 }
 0x370   :  { %v394_v16 = vsub.f32 %v676_v37, %v381_v14 }
 0x372   :  { %402 = vst.msk [vmem:[%s735_s6 + $0x10] sm:$0xff] %vm303_vm2, %v394_v16 }
 0x375   :  { %v469_v17 = vpop.eup %468 }
 0x376   :  { %v383_v18 = vmul.f32 0.6931472, %v469_v17  ;;  %v366_v19 = vpop.xlane.xlu0 %365 }
 0x377   :  { %470 = vlog2.f32 %v366_v19 }
 0x378   :  { %v395_v20 = vsub.f32 %v680_v42, %v383_v18 }
 0x37a   :  { %403 = vst.msk [vmem:[%s735_s6 + $0x18] sm:$0xff] %vm303_vm2, %v395_v20 }
 0x37d   :  { %v471_v21 = vpop.eup %470 }
 0x37e   :  { %v385_v22 = vmul.f32 0.6931472, %v471_v21  ;;  %v369_v23 = vpop.xlane.xlu1 %368 }
 0x37f   :  { %472 = vlog2.f32 %v369_v23 }
 0x380   :  { %v396_v24 = vsub.f32 %v684_v47, %v385_v22 }
 0x382   :  { %404 = vst.msk [vmem:[%s735_s6 + $0x20] sm:$0xff] %vm303_vm2, %v396_v24 }
 0x385   :  { %v473_v25 = vpop.eup %472 }
 0x386   :  { %v387_v26 = vmul.f32 0.6931472, %v473_v25  ;;  %v372_v27 = vpop.xlane.xlu2 %371 }
 0x387   :  { %474 = vlog2.f32 %v372_v27 }
 0x388   :  { %v397_v28 = vsub.f32 %v333_v52, %v387_v26 }
 0x38a   :  { %405 = vst.msk [vmem:[%s735_s6 + $0x28] sm:$0xff] %vm303_vm2, %v397_v28 }
 0x38d   :  { %v475_v29 = vpop.eup %474 }
 0x38e   :  { %v389_v30 = vmul.f32 0.6931472, %v475_v29  ;;  %v375_v31 = vpop.xlane.xlu0 %374 }
 0x38f   :  { %476 = vlog2.f32 %v375_v31 }
 0x390   :  { %v398_v32 = vsub.f32 %v334_v57, %v389_v30 }
 0x392   :  { %406 = vst.msk [vmem:[%s735_s6 + $0x30] sm:$0xff] %vm303_vm2, %v398_v32 }
 0x395   :  { %v477_v33 = vpop.eup %476 }
 0x396   :  { %v391_v34 = vmul.f32 0.6931472, %v477_v33 }
 0x398   :  { %v399_v35 = vsub.f32 %v335_v62, %v391_v34 }
 0x39a   :  { %407 = vst.msk [vmem:[%s735_s6 + $0x38] sm:$0xff] %vm303_vm2, %v399_v35 }

</bundles_post_ra>
